<compile_context>
chip_gen: v7x
topology: tpu7x:2x2x1
jax: 0.10.0
libtpu: 0.0.40
codegen_flags: <defaults>
</compile_context>

<pallas_src>
import functools

import jax
import jax.numpy as jnp
from jax.experimental import pallas as pl
from jax.experimental.pallas import tpu as pltpu


def _round_up(x, m):
    return ((x + m - 1) // m) * m


def classifier_kernel(ids_ref, emb_ref, w_ref, b_ref, out_ref, acc_ref,
                      *, tvc, count_dtype, static_s_unroll):
    v = pl.program_id(1)
    nv = pl.num_programs(1)

    @pl.when(v == 0)
    def _init():
        acc_ref[...] = jnp.zeros_like(acc_ref)

    TB, S = ids_ref.shape
    TV = emb_ref.shape[0]
    n_chunks = TV // tvc
    v_base = v * TV                       # first vocab id of this table tile

    # Build token counts one 128-wide vocab lane-chunk at a time.
    for c in range(n_chunks):             # static, small (TV / 128)
        # Chunk iota with the vocab offset folded in once (not per S step).
        iota_c = (jax.lax.broadcasted_iota(jnp.int32, (TB, tvc), 1)
                  + (v_base + c * tvc))

        def step(col, counts):
            # one (TB,1) column load + one compare + one int32 add per element
            return counts + (col == iota_c)

        counts0 = jnp.zeros((TB, tvc), jnp.int32)
        if static_s_unroll:
            counts = counts0
            for s in range(S):                                   # static slices
                counts = step(ids_ref[:, s:s + 1], counts)
        else:
            counts = jax.lax.fori_loop(
                0, S,
                lambda s, cnt: step(ids_ref[:, pl.ds(s, 1)], cnt),
                counts0, unroll=min(8, S))

        # Partial embedding sum on the MXU for this 128-row slice of the table.
        emb_c = emb_ref[c * tvc:(c + 1) * tvc, :]
        acc_ref[...] += jnp.dot(counts.astype(count_dtype),
                                emb_c.astype(count_dtype),
                                preferred_element_type=jnp.float32)

    @pl.when(v == nv - 1)
    def _finalize():
        mean_emb = acc_ref[...] * (1.0 / S)                      # (TB, E_pad) f32
        # fc layer: bf16 MXU GEMM against the pre-transposed (E_pad, C_pad) weight.
        logits = jnp.dot(mean_emb.astype(jnp.bfloat16), w_ref[...],
                         preferred_element_type=jnp.float32)     # (TB, C_pad)
        out_ref[...] = logits + b_ref[...]


def simple_classifier(ids, emb_table, fc_weight, fc_bias,
                      *, batch_tile=128, vocab_tile=1024, vocab_chunk=128):
    """ids: (B, S) int; emb_table: (V, E); fc_weight: (C, E); fc_bias: (C,)."""
    B, S = ids.shape
    V, E = emb_table.shape
    C = fc_weight.shape[0]

    TVC = vocab_chunk
    vocab_tile = _round_up(vocab_tile, TVC)
    TV = min(vocab_tile, _round_up(V, TVC))      # vocab tile, multiple of TVC
    assert TV % TVC == 0
    V_pad = _round_up(V, TV)

    batch_tile = _round_up(batch_tile, 8)
    B8 = _round_up(B, 8)
    TB = min(batch_tile, B8)
    # Ensure >= 2 batch tiles when the batch allows it so the "parallel" batch
    # axis can be sharded across both TensorCores (v7x megacore).
    if B8 >= 16 and -(-B8 // TB) < 2:
        TB = _round_up(B8 // 2, 8)
    B_pad = _round_up(B, TB)

    E_pad = _round_up(E, 128)                    # lane-dense embedding dim
    C_pad = _round_up(C, 128)                    # lane-dense class dim

    # Zero padding: padded vocab rows are never selected by real token ids,
    # padded E/C columns contribute exactly zero, padded batch rows are sliced.
    ids_p = jnp.pad(ids.astype(jnp.int32), ((0, B_pad - B), (0, 0)))
    emb_p = jnp.pad(emb_table.astype(jnp.float32),
                    ((0, V_pad - V), (0, E_pad - E))).astype(jnp.bfloat16)
    w_p = jnp.pad(fc_weight.astype(jnp.float32),
                  ((0, C_pad - C), (0, E_pad - E))).T.astype(jnp.bfloat16)  # (E_pad, C_pad)
    b_p = jnp.pad(fc_bias.astype(jnp.float32), (0, C_pad - C)).reshape(1, C_pad)

    grid = (B_pad // TB, V_pad // TV)

    # bf16 holds integer counts exactly up to 256; fall back to f32 for long S.
    count_dtype = jnp.bfloat16 if S <= 256 else jnp.float32
    static_s_unroll = S <= 128                   # full unroll only for short S

    kernel = functools.partial(classifier_kernel, tvc=TVC,
                               count_dtype=count_dtype,
                               static_s_unroll=static_s_unroll)

    # Scoped VMEM limit from the actual buffers (v5e default ~16 MiB is small),
    # capped so it also fits v7x's 64 MiB physical VMEM.
    vmem_est = (2 * TB * S * 4            # ids block, double-buffered
                + 2 * TV * E_pad * 2      # bf16 embedding tiles, double-buffered
                + 1 * E_pad * C_pad * 2   # bf16 fc weight, single-buffered
                + 1 * C_pad * 4           # fc bias, single-buffered
                + 2 * TB * C_pad * 4      # output block
                + TB * E_pad * 4)         # f32 accumulator scratch
    vmem_limit = int(min(max(2 * vmem_est, 8 << 20), 48 << 20))

    out = pl.pallas_call(
        kernel,
        out_shape=jax.ShapeDtypeStruct((B_pad, C_pad), jnp.float32),
        grid_spec=pltpu.PrefetchScalarGridSpec(
            num_scalar_prefetch=0,
            grid=grid,
            in_specs=[
                pl.BlockSpec((TB, S), lambda b, v: (b, 0)),          # token ids
                pl.BlockSpec((TV, E_pad), lambda b, v: (v, 0)),      # emb tile (bf16)
                pl.BlockSpec((E_pad, C_pad), lambda b, v: (0, 0),    # fc weight^T (bf16)
                             pipeline_mode=pl.Buffered(1)),
                pl.BlockSpec((1, C_pad), lambda b, v: (0, 0),        # fc bias
                             pipeline_mode=pl.Buffered(1)),
            ],
            out_specs=pl.BlockSpec((TB, C_pad), lambda b, v: (b, 0)),
            scratch_shapes=[pltpu.VMEM((TB, E_pad), jnp.float32)],
        ),
        compiler_params=pltpu.CompilerParams(
            dimension_semantics=("parallel", "arbitrary"),
            vmem_limit_bytes=vmem_limit,
        ),
    )(ids_p, emb_p, w_p, b_p)

    return out[:B, :C]


if __name__ == "__main__":
    # Small shapes implied by the forward: x is (batch, seq) of token ids.
    batch, seq = 2, 8
    vocab_size, emb_dim, n_class = 32, 32, 8

    key = jax.random.PRNGKey(0)
    k_ids, k_emb, k_w, k_b = jax.random.split(key, 4)

    ids = jax.random.randint(k_ids, (batch, seq), 0, vocab_size, dtype=jnp.int32)
    emb_table = jax.random.normal(k_emb, (vocab_size, emb_dim), dtype=jnp.float32)
    fc_weight = jax.random.normal(k_w, (n_class, emb_dim), dtype=jnp.float32) * 0.1
    fc_bias = jax.random.normal(k_b, (n_class,), dtype=jnp.float32) * 0.1

    out = simple_classifier(ids, emb_table, fc_weight, fc_bias)
    jax.block_until_ready(out)

    # Reference in plain JAX (same semantics as the PyTorch module).
    ref = emb_table[ids].mean(axis=1) @ fc_weight.T + fc_bias
    assert out.shape == (batch, n_class)
    # Embedding / fc matmuls run in bf16 (f32 accumulation) -> bf16 tolerance.
    assert jnp.allclose(out, ref, atol=2e-2, rtol=2e-2), "mismatch vs reference"

    print("KERNEL_OK")
</pallas_src>

<mosaic_0001>
module attributes {stable_mosaic.version = 11 : i64} {
  func.func @classifier_kernel(%arg0: i32, %arg1: i32, %arg2: memref<8x8xi32, #tpu.memory_space<vmem>>, %arg3: memref<128x128xbf16, #tpu.memory_space<vmem>>, %arg4: memref<128x128xbf16, #tpu.memory_space<vmem>>, %arg5: memref<1x128xf32, #tpu.memory_space<vmem>>, %arg6: memref<8x128xf32, #tpu.memory_space<vmem>>, %arg7: memref<8x128xf32, #tpu.memory_space<vmem>>) attributes {dimension_semantics = [#tpu.dimension_semantics<parallel>, #tpu.dimension_semantics<arbitrary>], iteration_bounds = array<i64: 1, 1>, scalar_prefetch = 0 : i64, scratch_operands = 1 : i64, tpu.core_type = #tpu.core_type<tc>, window_params = [{transform_indices = @transform_0, window_bounds = array<i64: 8, 8>}, {transform_indices = @transform_1, window_bounds = array<i64: 128, 128>}, {pipeline_mode = #tpu.pipeline_mode<synchronous>, transform_indices = @transform_2, window_bounds = array<i64: 128, 128>}, {pipeline_mode = #tpu.pipeline_mode<synchronous>, transform_indices = @transform_3, window_bounds = array<i64: 1, 128>}, {transform_indices = @transform_4, window_bounds = array<i64: 8, 128>}]} {
    %c0_i32 = arith.constant 0 : i32
    %0 = arith.cmpi eq, %arg1, %c0_i32 : i32
    %1 = arith.extui %0 : i1 to i32
    %c0_i32_0 = arith.constant 0 : i32
    %2 = arith.cmpi ne, %1, %c0_i32_0 : i32
    scf.if %2 {
      %cst_19 = arith.constant 0.000000e+00 : f32
      %58 = vector.broadcast %cst_19 : f32 to vector<8x128xf32>
      %c0_20 = arith.constant 0 : index
      %c0_21 = arith.constant 0 : index
      %59 = vector.load %arg7[%c0_20, %c0_21] : memref<8x128xf32, #tpu.memory_space<vmem>>, vector<8x128xf32>
      tpu.vector_store %arg7[%c0_20, %c0_21], %58 {strides = array<i32>} : memref<8x128xf32, #tpu.memory_space<vmem>>, vector<8x128xf32>,
    } else {
    }
    %c128_i32 = arith.constant 128 : i32
    %3 = arith.muli %arg1, %c128_i32 : i32
    %4 = tpu.iota {dimensions = array<i32: 1>} : vector<8x128xi32>
    %c0_i32_1 = arith.constant 0 : i32
    %5 = arith.addi %3, %c0_i32_1 : i32
    %6 = vector.broadcast %5 : i32 to vector<8x128xi32>
    %7 = arith.addi %4, %6 : vector<8x128xi32>
    %c0_i32_2 = arith.constant 0 : i32
    %8 = vector.broadcast %c0_i32_2 : i32 to vector<8x128xi32>
    %c0 = arith.constant 0 : index
    %c0_3 = arith.constant 0 : index
    %9 = vector.load %arg2[%c0, %c0_3] : memref<8x8xi32, #tpu.memory_space<vmem>>, vector<8x1xi32>
    %10 = vector.broadcast %9 : vector<8x1xi32> to vector<8x128xi32>
    %11 = arith.cmpi eq, %10, %7 : vector<8x128xi32>
    %12 = arith.extui %11 : vector<8x128xi1> to vector<8x128xi32>
    %13 = arith.addi %8, %12 : vector<8x128xi32>
    %c0_4 = arith.constant 0 : index
    %c1 = arith.constant 1 : index
    %14 = vector.load %arg2[%c0_4, %c1] : memref<8x8xi32, #tpu.memory_space<vmem>>, vector<8x1xi32>
    %15 = vector.broadcast %14 : vector<8x1xi32> to vector<8x128xi32>
    %16 = arith.cmpi eq, %15, %7 : vector<8x128xi32>
    %17 = arith.extui %16 : vector<8x128xi1> to vector<8x128xi32>
    %18 = arith.addi %13, %17 : vector<8x128xi32>
    %c0_5 = arith.constant 0 : index
    %c2 = arith.constant 2 : index
    %19 = vector.load %arg2[%c0_5, %c2] : memref<8x8xi32, #tpu.memory_space<vmem>>, vector<8x1xi32>
    %20 = vector.broadcast %19 : vector<8x1xi32> to vector<8x128xi32>
    %21 = arith.cmpi eq, %20, %7 : vector<8x128xi32>
    %22 = arith.extui %21 : vector<8x128xi1> to vector<8x128xi32>
    %23 = arith.addi %18, %22 : vector<8x128xi32>
    %c0_6 = arith.constant 0 : index
    %c3 = arith.constant 3 : index
    %24 = vector.load %arg2[%c0_6, %c3] : memref<8x8xi32, #tpu.memory_space<vmem>>, vector<8x1xi32>
    %25 = vector.broadcast %24 : vector<8x1xi32> to vector<8x128xi32>
    %26 = arith.cmpi eq, %25, %7 : vector<8x128xi32>
    %27 = arith.extui %26 : vector<8x128xi1> to vector<8x128xi32>
    %28 = arith.addi %23, %27 : vector<8x128xi32>
    %c0_7 = arith.constant 0 : index
    %c4 = arith.constant 4 : index
    %29 = vector.load %arg2[%c0_7, %c4] : memref<8x8xi32, #tpu.memory_space<vmem>>, vector<8x1xi32>
    %30 = vector.broadcast %29 : vector<8x1xi32> to vector<8x128xi32>
    %31 = arith.cmpi eq, %30, %7 : vector<8x128xi32>
    %32 = arith.extui %31 : vector<8x128xi1> to vector<8x128xi32>
    %33 = arith.addi %28, %32 : vector<8x128xi32>
    %c0_8 = arith.constant 0 : index
    %c5 = arith.constant 5 : index
    %34 = vector.load %arg2[%c0_8, %c5] : memref<8x8xi32, #tpu.memory_space<vmem>>, vector<8x1xi32>
    %35 = vector.broadcast %34 : vector<8x1xi32> to vector<8x128xi32>
    %36 = arith.cmpi eq, %35, %7 : vector<8x128xi32>
    %37 = arith.extui %36 : vector<8x128xi1> to vector<8x128xi32>
    %38 = arith.addi %33, %37 : vector<8x128xi32>
    %c0_9 = arith.constant 0 : index
    %c6 = arith.constant 6 : index
    %39 = vector.load %arg2[%c0_9, %c6] : memref<8x8xi32, #tpu.memory_space<vmem>>, vector<8x1xi32>
    %40 = vector.broadcast %39 : vector<8x1xi32> to vector<8x128xi32>
    %41 = arith.cmpi eq, %40, %7 : vector<8x128xi32>
    %42 = arith.extui %41 : vector<8x128xi1> to vector<8x128xi32>
    %43 = arith.addi %38, %42 : vector<8x128xi32>
    %c0_10 = arith.constant 0 : index
    %c7 = arith.constant 7 : index
    %44 = vector.load %arg2[%c0_10, %c7] : memref<8x8xi32, #tpu.memory_space<vmem>>, vector<8x1xi32>
    %45 = vector.broadcast %44 : vector<8x1xi32> to vector<8x128xi32>
    %46 = arith.cmpi eq, %45, %7 : vector<8x128xi32>
    %47 = arith.extui %46 : vector<8x128xi1> to vector<8x128xi32>
    %48 = arith.addi %43, %47 : vector<8x128xi32>
    %c0_11 = arith.constant 0 : index
    %c0_12 = arith.constant 0 : index
    %49 = vector.load %arg3[%c0_11, %c0_12] : memref<128x128xbf16, #tpu.memory_space<vmem>>, vector<128x128xbf16>
    %c0_13 = arith.constant 0 : index
    %c0_14 = arith.constant 0 : index
    %50 = vector.load %arg7[%c0_13, %c0_14] : memref<8x128xf32, #tpu.memory_space<vmem>>, vector<8x128xf32>
    %51 = arith.sitofp %48 : vector<8x128xi32> to vector<8x128xbf16>
    %cst = arith.constant dense<0.000000e+00> : vector<8x128xf32>
    %52 = tpu.matmul %51, %49, %cst {dimension_numbers = #tpu.dot_dimension_numbers<[1], [0], [0], [1], [0, 0, 1, 1], [], []>} : vector<8x128xbf16>, vector<128x128xbf16>, vector<8x128xf32> -> vector<8x128xf32>
    %53 = arith.addf %50, %52 : vector<8x128xf32>
    %c0_15 = arith.constant 0 : index
    %c0_16 = arith.constant 0 : index
    %54 = vector.load %arg7[%c0_15, %c0_16] : memref<8x128xf32, #tpu.memory_space<vmem>>, vector<8x128xf32>
    tpu.vector_store %arg7[%c0_15, %c0_16], %53 {strides = array<i32>} : memref<8x128xf32, #tpu.memory_space<vmem>>, vector<8x128xf32>,
    %c0_i32_17 = arith.constant 0 : i32
    %55 = arith.cmpi eq, %arg1, %c0_i32_17 : i32
    %56 = arith.extui %55 : i1 to i32
    %c0_i32_18 = arith.constant 0 : i32
    %57 = arith.cmpi ne, %56, %c0_i32_18 : i32
    scf.if %57 {
      %c0_19 = arith.constant 0 : index
      %c0_20 = arith.constant 0 : index
      %58 = vector.load %arg7[%c0_19, %c0_20] : memref<8x128xf32, #tpu.memory_space<vmem>>, vector<8x128xf32>
      %cst_21 = arith.constant 1.250000e-01 : f32
      %59 = vector.broadcast %cst_21 : f32 to vector<8x128xf32>
      %60 = arith.mulf %58, %59 : vector<8x128xf32>
      %61 = arith.truncf %60 : vector<8x128xf32> to vector<8x128xbf16>
      %c0_22 = arith.constant 0 : index
      %c0_23 = arith.constant 0 : index
      %62 = vector.load %arg4[%c0_22, %c0_23] : memref<128x128xbf16, #tpu.memory_space<vmem>>, vector<128x128xbf16>
      %cst_24 = arith.constant dense<0.000000e+00> : vector<8x128xf32>
      %63 = tpu.matmul %61, %62, %cst_24 {dimension_numbers = #tpu.dot_dimension_numbers<[1], [0], [0], [1], [0, 0, 1, 1], [], []>} : vector<8x128xbf16>, vector<128x128xbf16>, vector<8x128xf32> -> vector<8x128xf32>
      %c0_25 = arith.constant 0 : index
      %c0_26 = arith.constant 0 : index
      %64 = vector.load %arg5[%c0_25, %c0_26] : memref<1x128xf32, #tpu.memory_space<vmem>>, vector<1x128xf32>
      %65 = vector.broadcast %64 : vector<1x128xf32> to vector<8x128xf32>
      %66 = arith.addf %63, %65 : vector<8x128xf32>
      %c0_27 = arith.constant 0 : index
      %c0_28 = arith.constant 0 : index
      %67 = vector.load %arg6[%c0_27, %c0_28] : memref<8x128xf32, #tpu.memory_space<vmem>>, vector<8x128xf32>
      tpu.vector_store %arg6[%c0_27, %c0_28], %66 {strides = array<i32>} : memref<8x128xf32, #tpu.memory_space<vmem>>, vector<8x128xf32>,
    } else {
    }
    return
  }
  func.func @transform_0(%arg0: i32, %arg1: i32) -> (i32, i32) {
    %c0_i32 = arith.constant 0 : i32
    %c0_i32_0 = arith.constant 0 : i32
    return %arg0, %c0_i32 : i32, i32
  }
  func.func @transform_1(%arg0: i32, %arg1: i32) -> (i32, i32) {
    %c0_i32 = arith.constant 0 : i32
    %c0_i32_0 = arith.constant 0 : i32
    return %arg1, %c0_i32 : i32, i32
  }
  func.func @transform_2(%arg0: i32, %arg1: i32) -> (i32, i32) {
    %c0_i32 = arith.constant 0 : i32
    %c0_i32_0 = arith.constant 0 : i32
    %c0_i32_1 = arith.constant 0 : i32
    return %c0_i32, %c0_i32_0 : i32, i32
  }
  func.func @transform_3(%arg0: i32, %arg1: i32) -> (i32, i32) {
    %c0_i32 = arith.constant 0 : i32
    %c0_i32_0 = arith.constant 0 : i32
    %c0_i32_1 = arith.constant 0 : i32
    return %c0_i32, %c0_i32_0 : i32, i32
  }
  func.func @transform_4(%arg0: i32, %arg1: i32) -> (i32, i32) {
    %c0_i32 = arith.constant 0 : i32
    %c0_i32_0 = arith.constant 0 : i32
    return %arg0, %c0_i32 : i32, i32
  }
}

</mosaic_0001>

<bundles_post_ra>
// kernel: tpu_custom_call.1
= control target key start
LH: loop header
LB: loop body
LE: loop exit
PB: predicated region body
PF: predicated region fallthrough
CT: control target
= control target key end

     0   :  { %9 = vsyncpa [#allocation4], 0  ;;  %s694_s0 = inlined_call_operand.hbm [shape: s32[8,8], index: 0, kind: input, shape index: {}]   ;;  %s695_s1 = inlined_call_operand.hbm [shape: bf16[128,128], index: 1, kind: input, shape index: {}]   ;;  %s696_s2 = inlined_call_operand.hbm [shape: bf16[128,128], index: 2, kind: input, shape index: {}]   ;;  %s697_s3 = inlined_call_operand.vmem [shape: f32[1,128], index: 3, kind: input, shape index: {}]   ;;  %s698_s4 = inlined_call_operand.hbm [shape: f32[8,128], index: 4, kind: output, shape index: {}]  }
   0x1   :  { %10 = vsyncpa [#allocation7], 0 }
   0x2   :  { %11 = vsyncpa [#allocation5], 0  ;;  %s569_s15 = smov [#allocation6]   ;;  %s475_s19 = scalar_lea.hbm %s695_s1, 1024 }
   0x3   :  { %s27_s16 = sshll.u32 %s569_s15, 4  ;;  %p476_p0 = scmp.ne.s32.totalorder %s695_s1, %s475_s19  ;;  %s28_s16 = int_to_ptr.vmem [resolvable:$true] %s27_s16 }
   0x4   :  { %p479_p1 = scmp.lt.u32.totalorder %s475_s19, %s695_s1 }
   0x6   :  { %p481_p2 = pnand %p479_p1, %p476_p0 }
   0x8   :  { %484 = shalt.err (!%p481_p2)
}
   0x9   :  { %s485_s24 = scalar_lea.vmem %s28_s16, 1024  ;;  %p490_p4 = scmp.lt.s32.totalorder %s28_s16, %s28_s16 }
   0xa   :  { %p486_p3 = scmp.ne.s32.totalorder %s28_s16, %s485_s24  ;;  %p491_p5 = scmp.lt.s32.totalorder %s485_s24, %s485_s24 }
   0xc   :  { %p492_p6 = por %p491_p5, %p490_p4 }
   0xe   :  { %p493_p7 = pnand %p492_p6, %p486_p3 }
  0x10   :  { %496 = shalt.err (!%p493_p7)
}
  0x11   :  { %s570_s25 = smov 64   ;;  %s571_s26 = smov 4  }
  0x12   :  { %33 = dma.hbm_to_vmem [thread:$0]  %s695_s1, 1024, %s28_s16, [#allocation7], %s570_s25, %s570_s25, %s571_s26  }
  0x13   :  { %s572_s29 = smov [#allocation3]   ;;  %s573_s5 = smov [#allocation8]  }
  0x14   :  { %s18_s30 = sshll.u32 %s572_s29, 4  ;;  %s39_s6 = sshll.u32 %s573_s5, 4  ;;  %s19_s30 = int_to_ptr.vmem [resolvable:$true] %s18_s30  ;;  %s40_s6 = int_to_ptr.vmem [resolvable:$true] %s39_s6 }
  0x15   :  { %s497_s9 = scalar_lea.hbm %s694_s0, 128 }
  0x16   :  { %p498_p8 = scmp.ne.s32.totalorder %s694_s0, %s497_s9  ;;  %p501_p9 = scmp.lt.u32.totalorder %s497_s9, %s694_s0 }
  0x18   :  { %p503_p10 = pnand %p501_p9, %p498_p8 }
  0x1a   :  { %506 = shalt.err (!%p503_p10)
}
  0x1b   :  { %s507_s1 = scalar_lea.vmem %s19_s30, 128  ;;  %p512_p12 = scmp.lt.s32.totalorder %s19_s30, %s19_s30 }
  0x1c   :  { %p508_p11 = scmp.ne.s32.totalorder %s19_s30, %s507_s1  ;;  %p513_p13 = scmp.lt.s32.totalorder %s507_s1, %s507_s1 }
  0x1e   :  { %p514_p0 = por %p513_p13, %p512_p12 }
  0x20   :  { %p515_p1 = pnand %p514_p0, %p508_p11 }
  0x22   :  { %518 = shalt.err (!%p515_p1)
}
  0x23   :  { %21 = dma.hbm_to_vmem [thread:$0]  %s694_s0, 128, %s19_s30, [#allocation4]  }
  0x24   :  { %s519_s18 = scalar_lea.hbm %s696_s2, 1024 }
  0x25   :  { %p520_p2 = scmp.ne.s32.totalorder %s696_s2, %s519_s18  ;;  %p523_p3 = scmp.lt.u32.totalorder %s519_s18, %s696_s2 }
  0x27   :  { %p525_p4 = pnand %p523_p3, %p520_p2 }
  0x29   :  { %528 = shalt.err (!%p525_p4)
}
  0x2a   :  { %s529_s23 = scalar_lea.vmem %s40_s6, 1024  ;;  %p534_p6 = scmp.lt.s32.totalorder %s40_s6, %s40_s6 }
  0x2b   :  { %p530_p5 = scmp.ne.s32.totalorder %s40_s6, %s529_s23  ;;  %p535_p7 = scmp.lt.s32.totalorder %s529_s23, %s529_s23 }
  0x2d   :  { %p536_p8 = por %p535_p7, %p534_p6 }
  0x2f   :  { %p537_p9 = pnand %p536_p8, %p530_p5 }
  0x31   :  { %540 = shalt.err (!%p537_p9)
}
  0x32   :  { %45 = dma.hbm_to_vmem [thread:$0]  %s696_s2, 1024, %s40_s6, [#allocation7], %s570_s25, %s570_s25, %s571_s26  }
  0x33   :  { %563 = dma.done.wait [#allocation4], 128  }
  0x34   :  { %564 = vsyncadd [#allocation4], 4294967168 }
  0x35   :  { %565 = dma.done.wait [#allocation7], 2048  }
  0x36   :  { %566 = vsyncadd [#allocation7], 4294965248  ;;  %v574_v0 = vmov 2   ;;  %v575_v1 = vmov 0   ;;  %v576_v2 = vmov 0.0   ;;  %v68_v3 = vld [vmem:[#allocation3] sm:$0xff]  ;;  %v64_v25 = vlaneseq }
  0x37   :  { %452 = vset.pattern.permute.xlu1 %v574_v0  ;;  %450 = vset.pattern.permute.xlu0 %v575_v1  ;;  %v459_v4 = vld [vmem:[#allocation6] sm:$0xff]   ;;  %v460_v5 = vld [vmem:[#allocation6 + $0x8] sm:$0xff]   ;;  %v577_v6 = vmov 3   ;;  %v578_v7 = vmov 1   ;;  %v461_v8 = vld [vmem:[#allocation6 + $0x10] sm:$0xff]   ;;  %v579_v9 = vmov 4  }
  0x38   :  { %394 = vmatprep.subr.bf16.mxu0 %v576_v2  ;;  %414 = vmatprep.subr.bf16.mxu1 %v576_v2  ;;  %v580_v10 = vmov 5   ;;  %v462_v11 = vld [vmem:[#allocation6 + $0x18] sm:$0xff]   ;;  %v581_v12 = vmov 6   ;;  %v582_v13 = vmov 7   ;;  %v463_v14 = vld [vmem:[#allocation6 + $0x20] sm:$0xff]   ;;  %v464_v15 = vld [vmem:[#allocation6 + $0x28] sm:$0xff]  }
  0x39   :  { %81 = vperm.xlu1 %452, %v68_v3   ;;  %70 = vperm.xlu0 %450, %v68_v3   ;;  %v465_v16 = vld [vmem:[#allocation6 + $0x30] sm:$0xff]   ;;  %v466_v17 = vld [vmem:[#allocation6 + $0x38] sm:$0xff]   ;;  %vm583_vm0 = vmmov 0   ;;  %v467_v18 = vld [vmem:[#allocation8] sm:$0xff]   ;;  %v65_v28 = vand.u32 127, %v64_v25  ;;  %s584_s26 = smov [#allocation9]  }
  0x3a   :  { %395 = vmatpush3.bf16.msra.mxu0 %v459_v4  ;;  %410 = vmatprep.mubr.msk.bf16.mxu0 %vm583_vm0, %v576_v2  ;;  %v468_v19 = vld [vmem:[#allocation8 + $0x8] sm:$0xff]   ;;  %v469_v20 = vld [vmem:[#allocation8 + $0x10] sm:$0xff]   ;;  %v470_v21 = vld [vmem:[#allocation8 + $0x18] sm:$0xff]   ;;  %s349_s27 = sshll.u32 %s584_s26, 4  ;;  %s350_s27 = int_to_ptr.vmem [resolvable:$true] %s349_s27 }
  0x3b   :  { %396 = vmatprep.subr.bf16.mxu0 %v576_v2  ;;  %430 = vmatprep.mubr.msk.bf16.mxu1 %vm583_vm0, %v576_v2  ;;  %v471_v22 = vld [vmem:[#allocation8 + $0x20] sm:$0xff]   ;;  %v472_v23 = vld [vmem:[#allocation8 + $0x28] sm:$0xff]   ;;  %v473_v24 = vld [vmem:[#allocation8 + $0x30] sm:$0xff]   ;;  %s541_s28 = scalar_lea.vmem %s350_s27, 128  ;;  %p546_p11 = scmp.lt.s32.totalorder %s350_s27, %s350_s27 }
  0x3c   :  { %415 = vmatpush3.bf16.msra.mxu1 %v467_v18  ;;  %v474_v52 = vld [vmem:[#allocation8 + $0x38] sm:$0xff]   ;;  %p542_p10 = scmp.ne.s32.totalorder %s350_s27, %s541_s28  ;;  %p547_p12 = scmp.lt.s32.totalorder %s541_s28, %s541_s28 }
  0x3d   :  { %453 = vset.pattern.permute.xlu1 %v577_v6  ;;  %451 = vset.pattern.permute.xlu0 %v578_v7  ;;  %v367_v59 = vld [vmem:[%s697_s3] ss:$0 sm:$0xff] }
  0x3e   :  { %87 = vperm.xlu1 %453, %v68_v3   ;;  %75 = vperm.xlu0 %451, %v68_v3   ;;  %p548_p13 = por %p547_p12, %p546_p11 }
  0x3f   :  { %397 = vmatpush3.bf16.msra.mxu0 %v460_v5  ;;  %416 = vmatprep.subr.bf16.mxu1 %v576_v2 }
  0x40   :  { %398 = vmatprep.subr.bf16.mxu0 %v576_v2  ;;  %417 = vmatpush3.bf16.msra.mxu1 %v468_v19  ;;  %p549_p0 = pnand %p548_p13, %p542_p10 }
  0x41   :  { %418 = vmatprep.subr.bf16.mxu1 %v576_v2 }
  0x42   :  { %454 = vset.pattern.permute.xlu1 %v579_v9  ;;  %455 = vset.pattern.permute.xlu0 %v580_v10 }
  0x43   :  { %93 = vperm.xlu1 %454, %v68_v3   ;;  %99 = vperm.xlu0 %455, %v68_v3  }
  0x44   :  { %399 = vmatpush3.bf16.msra.mxu0 %v461_v8  ;;  %419 = vmatpush3.bf16.msra.mxu1 %v469_v20 }
  0x45   :  { %400 = vmatprep.subr.bf16.mxu0 %v576_v2  ;;  %420 = vmatprep.subr.bf16.mxu1 %v576_v2 }
  0x47   :  { %456 = vset.pattern.permute.xlu1 %v581_v12  ;;  %458 = vset.pattern.permute.xlu0 %v582_v13 }
  0x48   :  { %105 = vperm.xlu1 %456, %v68_v3   ;;  %401 = vmatpush3.bf16.msra.mxu0 %v462_v11 }
  0x49   :  { %402 = vmatprep.subr.bf16.mxu0 %v576_v2  ;;  %421 = vmatpush3.bf16.msra.mxu1 %v470_v21 }
  0x4a   :  { %422 = vmatprep.subr.bf16.mxu1 %v576_v2 }
  0x4c   :  { %457 = vset.pattern.permute.xlu1 %v582_v13  ;;  %403 = vmatpush3.bf16.msra.mxu0 %v463_v14 }
  0x4d   :  { %111 = vperm.xlu1 %457, %v68_v3   ;;  %404 = vmatprep.subr.bf16.mxu0 %v576_v2 }
  0x4e   :  { %423 = vmatpush3.bf16.msra.mxu1 %v471_v22 }
  0x4f   :  { %424 = vmatprep.subr.bf16.mxu1 %v576_v2 }
  0x50   :  { %405 = vmatpush3.bf16.msra.mxu0 %v464_v15 }
  0x51   :  { %406 = vmatprep.subr.bf16.mxu0 %v576_v2 }
  0x52   :  { %425 = vmatpush3.bf16.msra.mxu1 %v472_v23 }
  0x53   :  { %426 = vmatprep.subr.bf16.mxu1 %v576_v2 }
  0x54   :  { %407 = vmatpush3.bf16.msra.mxu0 %v465_v16 }
  0x55   :  { %408 = vmatprep.subr.bf16.mxu0 %v576_v2 }
  0x56   :  { %427 = vmatpush3.bf16.msra.mxu1 %v473_v24 }
  0x57   :  { %428 = vmatprep.subr.bf16.mxu1 %v576_v2 }
  0x58   :  { %409 = vmatpush3.bf16.msra.mxu0 %v466_v17 }
  0x5a   :  { %429 = vmatpush3.bf16.msra.mxu1 %v474_v52 }
  0xb8   :  { %v82_v26 = vpop.permute.xlu1 %81  ;;  %v71_v27 = vpop.permute.xlu0 %70 }
  0xb9   :  { %vm72_vm1 = vcmp.eq.s32.totalorder %v71_v27, %v65_v28  ;;  %vm83_vm2 = vcmp.eq.s32.totalorder %v82_v26, %v65_v28 }
  0xba   :  { %v73_v31 = vsel %vm72_vm1, 1, %v575_v1  ;;  %v84_v34 = vsel %vm83_vm2, 1, %v575_v1 }
  0xbd   :  { %v88_v29 = vpop.permute.xlu1 %87  ;;  %v76_v30 = vpop.permute.xlu0 %75 }
  0xbe   :  { %vm77_vm3 = vcmp.eq.s32.totalorder %v76_v30, %v65_v28  ;;  %vm89_vm4 = vcmp.eq.s32.totalorder %v88_v29, %v65_v28 }
  0xbf   :  { %v78_v32 = vsel %vm77_vm3, 1, %v575_v1  ;;  %v90_v38 = vsel %vm89_vm4, 1, %v575_v1 }
  0xc0   :  { %v79_v33 = vadd.s32 %v78_v32, %v73_v31 }
  0xc2   :  { %v85_v35 = vadd.s32 %v84_v34, %v79_v33  ;;  %v94_v36 = vpop.permute.xlu1 %93  ;;  %v100_v37 = vpop.permute.xlu0 %99 }
  0xc3   :  { %vm95_vm5 = vcmp.eq.s32.totalorder %v94_v36, %v65_v28  ;;  %vm101_vm6 = vcmp.eq.s32.totalorder %v100_v37, %v65_v28 }
  0xc4   :  { %v91_v39 = vadd.s32 %v90_v38, %v85_v35  ;;  %v96_v40 = vsel %vm95_vm5, 1, %v575_v1  ;;  %v102_v42 = vsel %vm101_vm6, 1, %v575_v1 }
  0xc6   :  { %v97_v41 = vadd.s32 %v96_v40, %v91_v39 }
  0xc7   :  { %v106_v43 = vpop.permute.xlu1 %105 }
  0xc8   :  { %vm107_vm7 = vcmp.eq.s32.totalorder %v106_v43, %v65_v28  ;;  %v103_v44 = vadd.s32 %v102_v42, %v97_v41 }
  0xc9   :  { %v108_v45 = vsel %vm107_vm7, 1, %v575_v1 }
  0xca   :  { %v109_v47 = vadd.s32 %v108_v45, %v103_v44 }
  0xcc   :  { %v112_v46 = vpop.permute.xlu1 %111 }
  0xcd   :  { %vm113_vm8 = vcmp.eq.s32.totalorder %v112_v46, %v65_v28 }
  0xce   :  { %v114_v48 = vsel %vm113_vm8, 1, %v575_v1 }
  0xcf   :  { %v115_v49 = vadd.s32 %v114_v48, %v109_v47 }
  0xd1   :  { %v133_v50 = vcvt.s32.f32 %v115_v49 }
  0xd3   :  { %v134_v51 = vpack.c.bf16 %v133_v50, %v133_v50 }
  0xd5   :  { %411 = vmatmul.mubr.bf16.vlgmr.msra.gmra.mrb[0].mxu0 %v134_v51 }
 0x1a8   :  { %v217_v53 = vpop.f32.mrb[0].mxu0 }
 0x1a9   :  { %v229_v54 = vmul.f32 0.125, %v217_v53  ;;  %v412_v55 = vpop.f32.mrb[1].mxu0 }
 0x1aa   :  { %v220_v56 = vpop.f32.mrb[2].mxu0 }
 0x1ab   :  { %v230_v57 = vpack.c.bf16 %v229_v54, %v229_v54  ;;  %v413_v58 = vpop.f32.mrb[3].mxu0 }
 0x1ad   :  { %431 = vmatmul.mubr.bf16.vlgmr.msra.gmra.mrb[0].mxu1 %v230_v57 }
 0x280   :  { %v336_v60 = vpop.f32.mrb[0].mxu1 }
 0x281   :  { %v337_v61 = vadd.f32 %v367_v59, %v336_v60  ;;  %v432_v62 = vpop.f32.mrb[1].mxu1 }
 0x282   :  { %v339_v63 = vpop.f32.mrb[2].mxu1 }
 0x283   :  { %342 = vst [vmem:[#allocation9] sm:$0xff] %v337_v61  ;;  %v433_v0 = vpop.f32.mrb[3].mxu1 }
 0x284   :  { %552 = shalt.err (!%p549_p0)
}
 0x285   :  { %s553_s3 = scalar_lea.hbm %s698_s4, 128 }
 0x286   :  { %p554_p1 = scmp.ne.s32.totalorder %s698_s4, %s553_s3  ;;  %p557_p2 = scmp.lt.u32.totalorder %s553_s3, %s698_s4 }
 0x288   :  { %p559_p3 = pnand %p557_p2, %p554_p1 }
 0x28a   :  { %562 = shalt.err (!%p559_p3)
}
 0x28b   :  { %352 = dma.vmem_to_hbm [thread:$0]  %s350_s27, 128, %s698_s4, [#allocation5]  }
 0x28c   :  { %567 = dma.done.wait [#allocation5], 128  }
 0x28d   :  { %568 = vsyncadd [#allocation5], 4294967168 }
 0x28e   :  { %356 = vsyncpa [#allocation4], 1 }
 0x28f   :  { %357 = vsyncpa [#allocation7], 1 }
 0x290   :  { %358 = vsyncpa [#allocation5], 1 }

</bundles_post_ra>
